<compile_context>
chip_gen: v7x
topology: tpu7x:2x2x1
jax: 0.10.0
libtpu: 0.0.40
codegen_flags: <defaults>
</compile_context>

<pallas_src>
import jax
import jax.numpy as jnp
from jax.experimental import pallas as pl
from jax.experimental.pallas import tpu as pltpu


def _round_up(v, m):
    return ((v + m - 1) // m) * m


def _patch_embed_kernel(p_ref, w_ref, b_ref, o_ref):
    # p_ref: (TM, K) bf16, w_ref: (Ep, K) bf16, b_ref: (1, Ep) f32.
    # Contract dim 1 of both operands (K-last on both sides, MXU-native);
    # accumulate in f32, add f32 bias, cast on store.
    acc = jax.lax.dot_general(
        p_ref[...],
        w_ref[...],
        dimension_numbers=(((1,), (1,)), ((), ())),
        preferred_element_type=jnp.float32,
    )
    o_ref[...] = (acc + b_ref[...]).astype(o_ref.dtype)


def _choose_row_tile(M, row_bytes, fixed_bytes):
    """Pick the row tile TM.

    Keeps 2x (double-buffered) in+out row tiles plus the resident weight/bias
    comfortably under v7x's 64 MiB VMEM, targets ~512 rows per step to amortize
    per-grid-step overhead, and makes the block count even whenever the grid is
    multi-block so both v7x TensorCores get equal work.
    """
    budget = max((40 << 20) - fixed_bytes, 4 << 20)
    tm_cap = min(512, max(16, budget // (2 * row_bytes)))
    if M <= tm_cap:
        return M  # single block: block dim == full array dim (exempt from tiling rules)
    nblk = pl.cdiv(M, tm_cap)
    nblk += nblk % 2  # even block count -> balanced v7x megacore split
    return max(16, _round_up(pl.cdiv(M, nblk), 16))


def patch_embedding_tokens(x, weight, bias, patch_size, out_dtype=None):
    """Patch embedding returning the token layout (N, Hp*Wp, emb_size)."""
    N, C, H, W = x.shape
    E = weight.shape[0]
    P = patch_size
    Hp, Wp = H // P, W // P
    M = N * Hp * Wp
    K = C * P * P
    out_dtype = x.dtype if out_dtype is None else out_dtype

    # ---- Patch extraction in bf16 (flatten order (C, P, P) matches PyTorch's
    # OIHW conv-weight flattening).  With allow_input_fusion below, XLA may fuse
    # this cast+transpose into the kernel's operand DMA instead of materializing
    # the (M, K) intermediate in HBM.
    xb = x.astype(jnp.bfloat16)
    patches = xb.reshape(N, C, Hp, P, Wp, P)
    patches = patches.transpose(0, 2, 4, 1, 3, 5).reshape(M, K)   # (M, K)

    w_mat = weight.reshape(E, K).astype(jnp.bfloat16)             # (E, K) -- no transpose
    b_mat = bias.reshape(1, E).astype(jnp.float32)                # (1, E)

    # ---- Lane-dense output: pad only E (weight/bias are small).  K stays
    # ragged; full-dim last dims are exempt from the 128 rule.
    Ep = _round_up(E, 128)
    if Ep != E:
        w_mat = jnp.pad(w_mat, ((0, Ep - E), (0, 0)))
        b_mat = jnp.pad(b_mat, ((0, 0), (0, Ep - E)))

    out_itemsize = jnp.dtype(out_dtype).itemsize
    row_bytes = K * 2 + Ep * out_itemsize              # bf16 input row + output row
    fixed_bytes = 2 * (Ep * K * 2) + 2 * (Ep * 4)      # double-buffered weight + bias
    TM = _choose_row_tile(M, row_bytes, fixed_bytes)
    grid = (pl.cdiv(M, TM),)

    cost = pl.CostEstimate(
        flops=2 * M * K * Ep,
        transcendentals=0,
        bytes_accessed=M * K * 2 + Ep * K * 2 + Ep * 4 + M * Ep * out_itemsize,
    )

    out = pl.pallas_call(
        _patch_embed_kernel,
        out_shape=jax.ShapeDtypeStruct((M, Ep), out_dtype),
        grid_spec=pltpu.PrefetchScalarGridSpec(
            num_scalar_prefetch=0,
            grid=grid,
            in_specs=[
                pl.BlockSpec((TM, K), lambda i: (i, 0)),    # patch-row tile
                pl.BlockSpec((Ep, K), lambda i: (0, 0)),    # grid-invariant weight
                pl.BlockSpec((1, Ep), lambda i: (0, 0)),    # grid-invariant bias
            ],
            out_specs=pl.BlockSpec((TM, Ep), lambda i: (i, 0)),
        ),
        compiler_params=pltpu.CompilerParams(
            dimension_semantics=("parallel",),
            vmem_limit_bytes=48 * 1024 * 1024,
            allow_input_fusion=[True, False, False],
        ),
        cost_estimate=cost,
    )(patches, w_mat, b_mat)

    if Ep != E:
        out = out[:, :E]
    return out.reshape(N, Hp * Wp, E)


def patch_embedding(x, weight, bias, patch_size, out_dtype=None):
    """Conv2d(kernel=stride=patch) patch embedding, NCHW in / NCHW out, matching
    the PyTorch module.  The final transpose is pure layout plumbing for PyTorch
    parity (a full extra HBM round trip of the output) -- Mixer/ViT consumers
    that want (N, tokens, emb) should call `patch_embedding_tokens` directly."""
    N, C, H, W = x.shape
    E = weight.shape[0]
    P = patch_size
    Hp, Wp = H // P, W // P
    tok = patch_embedding_tokens(x, weight, bias, P, out_dtype=out_dtype)  # (N, Hp*Wp, E)
    return tok.reshape(N, Hp, Wp, E).transpose(0, 3, 1, 2)                 # (N, E, Hp, Wp)


if __name__ == "__main__":
    # Small shapes consistent with the module's forward.
    N, C, H, W = 2, 4, 16, 16
    P = 8
    EMB = 32

    key = jax.random.PRNGKey(0)
    kx, kw, kb = jax.random.split(key, 3)

    x = jax.random.normal(kx, (N, C, H, W), dtype=jnp.float32)
    # PyTorch Conv2d parameter shapes: weight (emb, C, P, P), bias (emb,)
    weight = jax.random.normal(kw, (EMB, C, P, P), dtype=jnp.float32) * 0.02
    bias = jax.random.normal(kb, (EMB,), dtype=jnp.float32) * 0.02

    y = patch_embedding(x, weight, bias, P)
    y = jax.block_until_ready(y)
    assert y.shape == (N, EMB, H // P, W // P)
    assert y.dtype == jnp.float32

    # Tight check: same bf16-rounded operands, f32 accumulate.
    xr = x.astype(jnp.bfloat16).astype(jnp.float32)
    wr = weight.astype(jnp.bfloat16).astype(jnp.float32)
    ref_bf16 = jax.lax.conv_general_dilated(
        xr, wr, window_strides=(P, P), padding="VALID",
        dimension_numbers=("NCHW", "OIHW", "NCHW"),
        precision=jax.lax.Precision.HIGHEST,
    ) + bias.reshape(1, EMB, 1, 1)
    assert jnp.allclose(y, ref_bf16, atol=1e-3, rtol=1e-3)

    # Loose check vs the full-f32 conv (difference is only bf16 operand rounding).
    ref_f32 = jax.lax.conv_general_dilated(
        x, weight, window_strides=(P, P), padding="VALID",
        dimension_numbers=("NCHW", "OIHW", "NCHW"),
        precision=jax.lax.Precision.HIGHEST,
    ) + bias.reshape(1, EMB, 1, 1)
    assert jnp.allclose(y, ref_f32, atol=3e-2, rtol=3e-2)

    print("KERNEL_OK")
</pallas_src>

<mosaic_0001>
module attributes {stable_mosaic.version = 11 : i64} {
  func.func @_patch_embed_kernel(%arg0: i32, %arg1: memref<8x256xbf16, #tpu.memory_space<vmem>>, %arg2: memref<128x256xbf16, #tpu.memory_space<vmem>>, %arg3: memref<1x128xf32, #tpu.memory_space<vmem>>, %arg4: memref<8x128xf32, #tpu.memory_space<vmem>>) attributes {dimension_semantics = [#tpu.dimension_semantics<parallel>], iteration_bounds = array<i64: 1>, scalar_prefetch = 0 : i64, scratch_operands = 0 : i64, tpu.core_type = #tpu.core_type<tc>, window_params = [{transform_indices = @transform_0, window_bounds = array<i64: 8, 256>}, {pipeline_mode = #tpu.pipeline_mode<synchronous>, transform_indices = @transform_1, window_bounds = array<i64: 128, 256>}, {pipeline_mode = #tpu.pipeline_mode<synchronous>, transform_indices = @transform_2, window_bounds = array<i64: 1, 128>}, {transform_indices = @transform_3, window_bounds = array<i64: 8, 128>}]} {
    %c0 = arith.constant 0 : index
    %c0_0 = arith.constant 0 : index
    %0 = vector.load %arg1[%c0, %c0_0] : memref<8x256xbf16, #tpu.memory_space<vmem>>, vector<8x256xbf16>
    %c0_1 = arith.constant 0 : index
    %c0_2 = arith.constant 0 : index
    %1 = vector.load %arg2[%c0_1, %c0_2] : memref<128x256xbf16, #tpu.memory_space<vmem>>, vector<128x256xbf16>
    %cst = arith.constant dense<0.000000e+00> : vector<8x128xf32>
    %2 = tpu.matmul %0, %1, %cst {dimension_numbers = #tpu.dot_dimension_numbers<[1], [1], [0], [0], [0, 0, 1, 0], [], []>} : vector<8x256xbf16>, vector<128x256xbf16>, vector<8x128xf32> -> vector<8x128xf32>
    %c0_3 = arith.constant 0 : index
    %c0_4 = arith.constant 0 : index
    %3 = vector.load %arg3[%c0_3, %c0_4] : memref<1x128xf32, #tpu.memory_space<vmem>>, vector<1x128xf32>
    %4 = vector.broadcast %3 : vector<1x128xf32> to vector<8x128xf32>
    %5 = arith.addf %2, %4 : vector<8x128xf32>
    %c0_5 = arith.constant 0 : index
    %c0_6 = arith.constant 0 : index
    %6 = vector.load %arg4[%c0_5, %c0_6] : memref<8x128xf32, #tpu.memory_space<vmem>>, vector<8x128xf32>
    tpu.vector_store %arg4[%c0_5, %c0_6], %5 {strides = array<i32>} : memref<8x128xf32, #tpu.memory_space<vmem>>, vector<8x128xf32>,
    return
  }
  func.func @transform_0(%arg0: i32) -> (i32, i32) {
    %c0_i32 = arith.constant 0 : i32
    %c0_i32_0 = arith.constant 0 : i32
    return %arg0, %c0_i32 : i32, i32
  }
  func.func @transform_1(%arg0: i32) -> (i32, i32) {
    %c0_i32 = arith.constant 0 : i32
    %c0_i32_0 = arith.constant 0 : i32
    %c0_i32_1 = arith.constant 0 : i32
    return %c0_i32, %c0_i32_0 : i32, i32
  }
  func.func @transform_2(%arg0: i32) -> (i32, i32) {
    %c0_i32 = arith.constant 0 : i32
    %c0_i32_0 = arith.constant 0 : i32
    %c0_i32_1 = arith.constant 0 : i32
    return %c0_i32, %c0_i32_0 : i32, i32
  }
  func.func @transform_3(%arg0: i32) -> (i32, i32) {
    %c0_i32 = arith.constant 0 : i32
    %c0_i32_0 = arith.constant 0 : i32
    return %arg0, %c0_i32 : i32, i32
  }
}

</mosaic_0001>

<bundles_post_ra>
// kernel: tpu_custom_call.1
= control target key start
LH: loop header
LB: loop body
LE: loop exit
PB: predicated region body
PF: predicated region fallthrough
CT: control target
= control target key end

     0   :  { %8 = vsyncpa [#allocation3], 0  ;;  %s403_s0 = inlined_call_operand.hbm [shape: bf16[8,256], index: 0, kind: input, shape index: {}]   ;;  %s404_s1 = inlined_call_operand.hbm [shape: bf16[128,256], index: 1, kind: input, shape index: {}]   ;;  %s405_s2 = inlined_call_operand.vmem [shape: f32[1,128], index: 2, kind: input, shape index: {}]   ;;  %s406_s3 = inlined_call_operand.hbm [shape: f32[8,128], index: 3, kind: output, shape index: {}]  }
   0x1   :  { %9 = vsyncpa [#allocation6], 0 }
   0x2   :  { %10 = vsyncpa [#allocation4], 0  ;;  %s332_s12 = smov [#allocation2]   ;;  %s333_s14 = smov [#allocation5]  }
   0x3   :  { %s17_s13 = sshll.u32 %s332_s12, 4  ;;  %s26_s15 = sshll.u32 %s333_s14, 4  ;;  %s18_s13 = int_to_ptr.vmem [resolvable:$true] %s17_s13  ;;  %s357_s15 = int_to_ptr.vmem [resolvable:$true] %s26_s15 }
   0x4   :  { %s260_s18 = scalar_lea.hbm %s403_s0, 128 }
   0x5   :  { %p261_p0 = scmp.ne.s32.totalorder %s403_s0, %s260_s18  ;;  %p264_p1 = scmp.lt.u32.totalorder %s260_s18, %s403_s0 }
   0x7   :  { %p266_p2 = pnand %p264_p1, %p261_p0 }
   0x9   :  { %269 = shalt.err (!%p266_p2)
}
   0xa   :  { %s270_s23 = scalar_lea.vmem %s18_s13, 128  ;;  %p275_p4 = scmp.lt.s32.totalorder %s18_s13, %s18_s13 }
   0xb   :  { %p271_p3 = scmp.ne.s32.totalorder %s18_s13, %s270_s23  ;;  %p276_p5 = scmp.lt.s32.totalorder %s270_s23, %s270_s23 }
   0xd   :  { %p277_p6 = por %p276_p5, %p275_p4 }
   0xf   :  { %p278_p7 = pnand %p277_p6, %p271_p3 }
  0x11   :  { %281 = shalt.err (!%p278_p7)
}
  0x12   :  { %20 = dma.hbm_to_vmem [thread:$0]  %s403_s0, 128, %s18_s13, [#allocation3]  }
  0x13   :  { %s282_s28 = scalar_lea.hbm %s404_s1, 2048 }
  0x14   :  { %p283_p8 = scmp.ne.s32.totalorder %s404_s1, %s282_s28  ;;  %p286_p9 = scmp.lt.u32.totalorder %s282_s28, %s404_s1 }
  0x16   :  { %p288_p10 = pnand %p286_p9, %p283_p8 }
  0x18   :  { %291 = shalt.err (!%p288_p10)
}
  0x19   :  { %s292_s6 = scalar_lea.vmem %s357_s15, 2048  ;;  %p297_p12 = scmp.lt.s32.totalorder %s357_s15, %s357_s15 }
  0x1a   :  { %p293_p11 = scmp.ne.s32.totalorder %s357_s15, %s292_s6  ;;  %p298_p13 = scmp.lt.s32.totalorder %s292_s6, %s292_s6 }
  0x1c   :  { %p299_p0 = por %p298_p13, %p297_p12 }
  0x1e   :  { %p300_p1 = pnand %p299_p0, %p293_p11 }
  0x20   :  { %303 = shalt.err (!%p300_p1)
}
  0x21   :  { %s334_s0 = smov 128   ;;  %s335_s7 = smov 8  }
  0x22   :  { %32 = dma.hbm_to_vmem [thread:$0]  %s404_s1, 2048, %s357_s15, [#allocation6], %s334_s0, %s334_s0, %s335_s7  }
  0x23   :  { %326 = dma.done.wait [#allocation3], 128  }
  0x24   :  { %327 = vsyncadd [#allocation3], 4294967168 }
  0x25   :  { %328 = dma.done.wait [#allocation6], 2048  }
  0x26   :  { %329 = vsyncadd [#allocation6], 4294965248  ;;  %v234_v0 = vld [vmem:[#allocation5 + $0x4] ss:$8 sps:$4 sm:$0xff]   ;;  %v236_v1 = vld [vmem:[#allocation5] ss:$8 sps:$4 sm:$0xff]  }
  0x27   :  { %153 = vmatprep.subr.bf16.mxu0 %v234_v0  ;;  %v237_v2 = vld [vmem:[#allocation5 + $0x14] ss:$8 sps:$4 sm:$0xff]   ;;  %v239_v3 = vld [vmem:[#allocation5 + $0x10] ss:$8 sps:$4 sm:$0xff]   ;;  %v240_v4 = vld [vmem:[#allocation5 + $0x24] ss:$8 sps:$4 sm:$0xff]  }
  0x28   :  { %154 = vmatpush1.bf16.xpose.msra.mxu0 %v236_v1  ;;  %v42_v5 = vld [vmem:[#allocation2] sm:$0xff]  ;;  %v242_v7 = vld [vmem:[#allocation5 + $0x20] ss:$8 sps:$4 sm:$0xff]   ;;  %v246_v10 = vld [vmem:[#allocation5 + $0x44] ss:$8 sps:$4 sm:$0xff]   ;;  %s336_s11 = smov [#allocation7]  }
  0x29   :  { %155 = vmatprep.subr.bf16.mxu0 %v237_v2  ;;  %v212_v6 = vcombine.high %v42_v5, %v42_v5  ;;  %v243_v8 = vld [vmem:[#allocation5 + $0x34] ss:$8 sps:$4 sm:$0xff]   ;;  %v245_v9 = vld [vmem:[#allocation5 + $0x30] ss:$8 sps:$4 sm:$0xff]   ;;  %v248_v11 = vld [vmem:[#allocation5 + $0x40] ss:$8 sps:$4 sm:$0xff]   ;;  %v211_v18 = vcombine.low %v42_v5, %v42_v5 }
  0x2a   :  { %v249_v12 = vld [vmem:[#allocation5 + $0x54] ss:$8 sps:$4 sm:$0xff]   ;;  %v251_v13 = vld [vmem:[#allocation5 + $0x50] ss:$8 sps:$4 sm:$0xff]   ;;  %v252_v14 = vld [vmem:[#allocation5 + $0x64] ss:$8 sps:$4 sm:$0xff]  }
  0x2b   :  { %185 = vmatprep.mubr.bf16.mxu0 %v212_v6  ;;  %v254_v15 = vld [vmem:[#allocation5 + $0x60] ss:$8 sps:$4 sm:$0xff]   ;;  %v255_v16 = vld [vmem:[#allocation5 + $0x74] ss:$8 sps:$4 sm:$0xff]   ;;  %v257_v17 = vld [vmem:[#allocation5 + $0x70] ss:$8 sps:$4 sm:$0xff]  }
  0x2c   :  { %v210_v19 = vld [vmem:[%s405_s2] ss:$0 sm:$0xff]  ;;  %s200_s12 = sshll.u32 %s336_s11, 4  ;;  %s201_s12 = int_to_ptr.vmem [resolvable:$true] %s200_s12 }
  0x2d   :  { %s304_s13 = scalar_lea.vmem %s201_s12, 128  ;;  %p309_p3 = scmp.lt.s32.totalorder %s201_s12, %s201_s12 }
  0x2e   :  { %p305_p2 = scmp.ne.s32.totalorder %s201_s12, %s304_s13  ;;  %p310_p4 = scmp.lt.s32.totalorder %s304_s13, %s304_s13 }
  0x30   :  { %156 = vmatpush1.bf16.xpose.msra.mxu0 %v239_v3  ;;  %p311_p5 = por %p310_p4, %p309_p3 }
  0x31   :  { %157 = vmatprep.subr.bf16.mxu0 %v240_v4 }
  0x32   :  { %p312_p6 = pnand %p311_p5, %p305_p2 }
  0x38   :  { %158 = vmatpush1.bf16.xpose.msra.mxu0 %v242_v7 }
  0x39   :  { %159 = vmatprep.subr.bf16.mxu0 %v243_v8 }
  0x40   :  { %160 = vmatpush1.bf16.xpose.msra.mxu0 %v245_v9 }
  0x41   :  { %161 = vmatprep.subr.bf16.mxu0 %v246_v10 }
  0x48   :  { %162 = vmatpush1.bf16.xpose.msra.mxu0 %v248_v11 }
  0x49   :  { %163 = vmatprep.subr.bf16.mxu0 %v249_v12 }
  0x50   :  { %164 = vmatpush1.bf16.xpose.msra.mxu0 %v251_v13 }
  0x51   :  { %165 = vmatprep.subr.bf16.mxu0 %v252_v14 }
  0x58   :  { %166 = vmatpush1.bf16.xpose.msra.mxu0 %v254_v15 }
  0x59   :  { %167 = vmatprep.subr.bf16.mxu0 %v255_v16 }
  0x60   :  { %168 = vmatpush1.bf16.xpose.msra.mxu0 %v257_v17 }
  0x67   :  { %186 = vmatmul.mubr.bf16.vlgmr.msra.gmra.mrb[0].mxu0 %v211_v18 }
 0x13a   :  { %v187_v20 = vpop.f32.mrb[0].mxu0 }
 0x13b   :  { %v188_v21 = vadd.f32 %v210_v19, %v187_v20  ;;  %v189_v22 = vpop.f32.mrb[1].mxu0 }
 0x13c   :  { %v190_v23 = vpop.f32.mrb[2].mxu0 }
 0x13d   :  { %193 = vst [vmem:[#allocation7] sm:$0xff] %v188_v21  ;;  %v191_v24 = vpop.f32.mrb[3].mxu0 }
 0x13e   :  { %315 = shalt.err (!%p312_p6)
}
 0x13f   :  { %s316_s2 = scalar_lea.hbm %s406_s3, 128 }
 0x140   :  { %p317_p7 = scmp.ne.s32.totalorder %s406_s3, %s316_s2  ;;  %p320_p8 = scmp.lt.u32.totalorder %s316_s2, %s406_s3 }
 0x142   :  { %p322_p9 = pnand %p320_p8, %p317_p7 }
 0x144   :  { %325 = shalt.err (!%p322_p9)
}
 0x145   :  { %203 = dma.vmem_to_hbm [thread:$0]  %s201_s12, 128, %s406_s3, [#allocation4]  }
 0x146   :  { %330 = dma.done.wait [#allocation4], 128  }
 0x147   :  { %331 = vsyncadd [#allocation4], 4294967168 }
 0x148   :  { %207 = vsyncpa [#allocation3], 1 }
 0x149   :  { %208 = vsyncpa [#allocation6], 1 }
 0x14a   :  { %209 = vsyncpa [#allocation4], 1 }

</bundles_post_ra>
